<compile_context>
chip_gen: v5e
topology: v5e:2x2
jax: 0.10.0
libtpu: 0.0.40
codegen_flags: <defaults>
</compile_context>

<pallas_src>
import math
import functools

import jax
import jax.numpy as jnp
from jax import lax
from jax.experimental import pallas as pl
from jax.experimental.pallas import tpu as pltpu


def _mha_kernel(key_ref, value_ref, query_ref,
                wk_ref, bk_ref, wq_ref, bq_ref, wv_ref, bv_ref,
                wo_ref, bo_ref,
                out_ref, attn_ref,
                ctx_ref,
                *, head_count, d_k, d_v):
    # Ref shapes (batch dim squeezed):
    #   key/value : (Lk, D)      query : (TQ, D)
    #   out       : (TQ, D)      attn  : (H, TQ, Lk)
    #   ctx_ref   : VMEM scratch (TQ, H*d_v) f32
    k_in = key_ref[...]
    v_in = value_ref[...]
    q_in = query_ref[...]

    scale = 1.0 / math.sqrt(d_k)

    # Input projections: single big MXU matmuls (contraction over model_dim).
    k_proj = jnp.dot(k_in, wk_ref[...], preferred_element_type=jnp.float32) + bk_ref[...]
    v_proj = jnp.dot(v_in, wv_ref[...], preferred_element_type=jnp.float32) + bv_ref[...]
    # Scale hoisted out of the head loop (one (TQ, H*d_k) VPU multiply).
    q_proj = (jnp.dot(q_in, wq_ref[...], preferred_element_type=jnp.float32)
              + bq_ref[...]) * scale

    # Contract the last dim of both operands -> no explicit K transpose (XLU-free).
    dn = (((1,), (1,)), ((), ()))

    # head_count is small & static -> unrolled loop with static slices.
    # TODO(synk): for large H / production shapes, batch heads into a single
    # (H, TQ, d)-shaped einsum to reduce code bloat and improve MXU packing.
    for h in range(head_count):
        qh = q_proj[:, h * d_k:(h + 1) * d_k]            # (TQ, d_k)
        kh = k_proj[:, h * d_k:(h + 1) * d_k]            # (Lk, d_k)
        vh = v_proj[:, h * d_v:(h + 1) * d_v]            # (Lk, d_v)

        # scores = q @ k^T, accumulated in f32 (matches reference `.float()`).
        s = lax.dot_general(qh, kh, dn, preferred_element_type=jnp.float32)  # (TQ, Lk)

        # softmax over the key axis.
        s = s - jnp.max(s, axis=-1, keepdims=True)
        e = jnp.exp(s)
        attn = e * pl.reciprocal(jnp.sum(e, axis=-1, keepdims=True), approx=False)

        attn_ref[h] = attn                               # lane-dense (TQ, Lk) store
        # TODO(synk): dropout is identity at inference time (nn.Dropout in eval).

        # Write this head's context into its column slab of the VMEM scratch
        # (no jnp.concatenate of narrow tiles).
        ctx_ref[:, h * d_v:(h + 1) * d_v] = jnp.dot(
            attn, vh, preferred_element_type=jnp.float32)

    # Output projection from the lane-dense (TQ, H*d_v) context slab.
    out_ref[...] = jnp.dot(ctx_ref[...], wo_ref[...],
                           preferred_element_type=jnp.float32) + bo_ref[...]


def multi_headed_attention(key, value, query, params,
                           *, head_count, d_k, d_v, block_q=None):
    """Returns (final_output, attn_per_head_list, coverage_vector=None)."""
    B, Lk, D = key.shape
    Lq = query.shape[1]

    wk, bk, wq, bq, wv, bv, wo, bo = params

    # Tile the query axis: keeps the (H, TQ, Lk) attention block small (v7x
    # VMEM) and provides a second parallel grid axis. 128-aligned when possible.
    if block_q is None:
        block_q = 128 if (Lq % 128 == 0) else Lq
    TQ = block_q
    assert Lq % TQ == 0, "Lq must be divisible by the query tile size"
    num_q = Lq // TQ

    kernel = functools.partial(_mha_kernel,
                               head_count=head_count, d_k=d_k, d_v=d_v)

    def resident(shape):
        # Full-array operand with a constant index_map: fetched once and kept
        # resident in VMEM across the whole grid (weights / biases).
        return pl.BlockSpec(shape, lambda b, qi: (0,) * len(shape))

    out, attn = pl.pallas_call(
        kernel,
        out_shape=(
            jax.ShapeDtypeStruct((B, Lq, D), jnp.float32),
            jax.ShapeDtypeStruct((B, head_count, Lq, Lk), jnp.float32),
        ),
        grid_spec=pltpu.PrefetchScalarGridSpec(
            num_scalar_prefetch=0,
            grid=(B, num_q),
            in_specs=[
                # batch dim squeezed (None) -> kernel sees 2-D refs.
                pl.BlockSpec((None, Lk, D), lambda b, qi: (b, 0, 0)),   # key
                pl.BlockSpec((None, Lk, D), lambda b, qi: (b, 0, 0)),   # value
                pl.BlockSpec((None, TQ, D), lambda b, qi: (b, qi, 0)),  # query
                resident(wk.shape), resident(bk.shape),                 # key proj
                resident(wq.shape), resident(bq.shape),                 # query proj
                resident(wv.shape), resident(bv.shape),                 # value proj
                resident(wo.shape), resident(bo.shape),                 # output proj
            ],
            out_specs=[
                pl.BlockSpec((None, TQ, D), lambda b, qi: (b, qi, 0)),
                pl.BlockSpec((None, head_count, TQ, Lk),
                             lambda b, qi: (b, 0, qi, 0)),
            ],
            scratch_shapes=[
                pltpu.VMEM((TQ, head_count * d_v), jnp.float32),  # context slab
            ],
        ),
        compiler_params=pltpu.CompilerParams(
            dimension_semantics=("parallel", "parallel"),
            vmem_limit_bytes=64 * 1024 * 1024,
        ),
    )(key, value, query, wk, bk, wq, bq, wv, bv, wo, bo)

    attn_per_head = [attn[:, h] for h in range(head_count)]
    return out, attn_per_head, None


def _reference(key, value, query, params, *, head_count, d_k, d_v):
    """Pure-JAX reference mirroring the PyTorch forward (no cache/mask/relpos)."""
    wk, bk, wq, bq, wv, bv, wo, bo = params
    B, Lk, D = key.shape
    Lq = query.shape[1]

    def shape_heads(x, dim):
        return x.reshape(B, -1, head_count, dim).transpose(0, 2, 1, 3)

    k = shape_heads(key @ wk + bk, d_k)
    v = shape_heads(value @ wv + bv, d_v)
    q = shape_heads(query @ wq + bq, d_k) / math.sqrt(d_k)

    scores = jnp.einsum("bhqd,bhkd->bhqk", q, k)
    attn = jax.nn.softmax(scores, axis=-1)
    ctx = jnp.einsum("bhqk,bhkd->bhqd", attn, v)
    ctx = ctx.transpose(0, 2, 1, 3).reshape(B, Lq, head_count * d_v)
    return ctx @ wo + bo, attn


if __name__ == "__main__":
    # Small shapes consistent with the module.
    B, L, model_dim = 2, 8, 32
    head_count, d_k, d_v = 4, 8, 8

    rng = jax.random.PRNGKey(0)
    keys = jax.random.split(rng, 12)

    def init_linear(kw, kb, fan_in, fan_out):
        bound = 1.0 / math.sqrt(fan_in)
        w = jax.random.uniform(kw, (fan_in, fan_out), jnp.float32, -bound, bound)
        b = jax.random.uniform(kb, (1, fan_out), jnp.float32, -bound, bound)
        return w, b

    wk, bk = init_linear(keys[0], keys[1], model_dim, head_count * d_k)
    wq, bq = init_linear(keys[2], keys[3], model_dim, head_count * d_k)
    wv, bv = init_linear(keys[4], keys[5], model_dim, head_count * d_v)
    wo, bo = init_linear(keys[6], keys[7], head_count * d_v, model_dim)
    params = (wk, bk, wq, bq, wv, bv, wo, bo)

    key_in = jax.random.normal(keys[8], (B, L, model_dim), jnp.float32)
    value_in = jax.random.normal(keys[9], (B, L, model_dim), jnp.float32)
    query_in = jax.random.normal(keys[10], (B, L, model_dim), jnp.float32)

    out, attn_per_head, cov = multi_headed_attention(
        key_in, value_in, query_in, params,
        head_count=head_count, d_k=d_k, d_v=d_v)
    out = jax.block_until_ready(out)

    ref_out, ref_attn = _reference(key_in, value_in, query_in, params,
                                   head_count=head_count, d_k=d_k, d_v=d_v)
    assert jnp.allclose(out, ref_out, atol=1e-4, rtol=1e-4)
    for h in range(head_count):
        assert jnp.allclose(attn_per_head[h], ref_attn[:, h], atol=1e-5, rtol=1e-5)
    assert cov is None

    print("KERNEL_OK")
</pallas_src>

<mosaic_0001>
module attributes {stable_mosaic.version = 11 : i64} {
  func.func @_mha_kernel(%arg0: i32, %arg1: i32, %arg2: memref<1x8x32xf32, #tpu.memory_space<vmem>>, %arg3: memref<1x8x32xf32, #tpu.memory_space<vmem>>, %arg4: memref<1x8x32xf32, #tpu.memory_space<vmem>>, %arg5: memref<32x32xf32, #tpu.memory_space<vmem>>, %arg6: memref<1x32xf32, #tpu.memory_space<vmem>>, %arg7: memref<32x32xf32, #tpu.memory_space<vmem>>, %arg8: memref<1x32xf32, #tpu.memory_space<vmem>>, %arg9: memref<32x32xf32, #tpu.memory_space<vmem>>, %arg10: memref<1x32xf32, #tpu.memory_space<vmem>>, %arg11: memref<32x32xf32, #tpu.memory_space<vmem>>, %arg12: memref<1x32xf32, #tpu.memory_space<vmem>>, %arg13: memref<1x8x32xf32, #tpu.memory_space<vmem>>, %arg14: memref<1x4x8x8xf32, #tpu.memory_space<vmem>>, %arg15: memref<8x32xf32, #tpu.memory_space<vmem>>) attributes {dimension_semantics = [#tpu.dimension_semantics<parallel>, #tpu.dimension_semantics<parallel>], iteration_bounds = array<i64: 2, 1>, scalar_prefetch = 0 : i64, scratch_operands = 1 : i64, tpu.core_type = #tpu.core_type<tc>, window_params = [{transform_indices = @transform_0, window_bounds = array<i64: 1, 8, 32>}, {transform_indices = @transform_1, window_bounds = array<i64: 1, 8, 32>}, {transform_indices = @transform_2, window_bounds = array<i64: 1, 8, 32>}, {pipeline_mode = #tpu.pipeline_mode<synchronous>, transform_indices = @transform_3, window_bounds = array<i64: 32, 32>}, {pipeline_mode = #tpu.pipeline_mode<synchronous>, transform_indices = @transform_4, window_bounds = array<i64: 1, 32>}, {pipeline_mode = #tpu.pipeline_mode<synchronous>, transform_indices = @transform_5, window_bounds = array<i64: 32, 32>}, {pipeline_mode = #tpu.pipeline_mode<synchronous>, transform_indices = @transform_6, window_bounds = array<i64: 1, 32>}, {pipeline_mode = #tpu.pipeline_mode<synchronous>, transform_indices = @transform_7, window_bounds = array<i64: 32, 32>}, {pipeline_mode = #tpu.pipeline_mode<synchronous>, transform_indices = @transform_8, window_bounds = array<i64: 1, 32>}, {pipeline_mode = #tpu.pipeline_mode<synchronous>, transform_indices = @transform_9, window_bounds = array<i64: 32, 32>}, {pipeline_mode = #tpu.pipeline_mode<synchronous>, transform_indices = @transform_10, window_bounds = array<i64: 1, 32>}, {transform_indices = @transform_11, window_bounds = array<i64: 1, 8, 32>}, {transform_indices = @transform_12, window_bounds = array<i64: 1, 4, 8, 8>}]} {
    %c0 = arith.constant 0 : index
    %c0_0 = arith.constant 0 : index
    %c0_1 = arith.constant 0 : index
    %0 = vector.load %arg2[%c0, %c0_0, %c0_1] : memref<1x8x32xf32, #tpu.memory_space<vmem>>, vector<1x8x32xf32>
    %1 = vector.shape_cast %0 : vector<1x8x32xf32> to vector<8x32xf32>
    %c0_2 = arith.constant 0 : index
    %c0_3 = arith.constant 0 : index
    %c0_4 = arith.constant 0 : index
    %2 = vector.load %arg3[%c0_2, %c0_3, %c0_4] : memref<1x8x32xf32, #tpu.memory_space<vmem>>, vector<1x8x32xf32>
    %3 = vector.shape_cast %2 : vector<1x8x32xf32> to vector<8x32xf32>
    %c0_5 = arith.constant 0 : index
    %c0_6 = arith.constant 0 : index
    %c0_7 = arith.constant 0 : index
    %4 = vector.load %arg4[%c0_5, %c0_6, %c0_7] : memref<1x8x32xf32, #tpu.memory_space<vmem>>, vector<1x8x32xf32>
    %5 = vector.shape_cast %4 : vector<1x8x32xf32> to vector<8x32xf32>
    %c0_8 = arith.constant 0 : index
    %c0_9 = arith.constant 0 : index
    %6 = vector.load %arg5[%c0_8, %c0_9] : memref<32x32xf32, #tpu.memory_space<vmem>>, vector<32x32xf32>
    %cst = arith.constant dense<0.000000e+00> : vector<8x32xf32>
    %7 = tpu.matmul %1, %6, %cst {dimension_numbers = #tpu.dot_dimension_numbers<[1], [0], [0], [1], [0, 0, 1, 1], [], []>} : vector<8x32xf32>, vector<32x32xf32>, vector<8x32xf32> -> vector<8x32xf32>
    %c0_10 = arith.constant 0 : index
    %c0_11 = arith.constant 0 : index
    %8 = vector.load %arg6[%c0_10, %c0_11] : memref<1x32xf32, #tpu.memory_space<vmem>>, vector<1x32xf32>
    %9 = vector.broadcast %8 : vector<1x32xf32> to vector<8x32xf32>
    %10 = arith.addf %7, %9 : vector<8x32xf32>
    %c0_12 = arith.constant 0 : index
    %c0_13 = arith.constant 0 : index
    %11 = vector.load %arg9[%c0_12, %c0_13] : memref<32x32xf32, #tpu.memory_space<vmem>>, vector<32x32xf32>
    %cst_14 = arith.constant dense<0.000000e+00> : vector<8x32xf32>
    %12 = tpu.matmul %3, %11, %cst_14 {dimension_numbers = #tpu.dot_dimension_numbers<[1], [0], [0], [1], [0, 0, 1, 1], [], []>} : vector<8x32xf32>, vector<32x32xf32>, vector<8x32xf32> -> vector<8x32xf32>
    %c0_15 = arith.constant 0 : index
    %c0_16 = arith.constant 0 : index
    %13 = vector.load %arg10[%c0_15, %c0_16] : memref<1x32xf32, #tpu.memory_space<vmem>>, vector<1x32xf32>
    %14 = vector.broadcast %13 : vector<1x32xf32> to vector<8x32xf32>
    %15 = arith.addf %12, %14 : vector<8x32xf32>
    %c0_17 = arith.constant 0 : index
    %c0_18 = arith.constant 0 : index
    %16 = vector.load %arg7[%c0_17, %c0_18] : memref<32x32xf32, #tpu.memory_space<vmem>>, vector<32x32xf32>
    %cst_19 = arith.constant dense<0.000000e+00> : vector<8x32xf32>
    %17 = tpu.matmul %5, %16, %cst_19 {dimension_numbers = #tpu.dot_dimension_numbers<[1], [0], [0], [1], [0, 0, 1, 1], [], []>} : vector<8x32xf32>, vector<32x32xf32>, vector<8x32xf32> -> vector<8x32xf32>
    %c0_20 = arith.constant 0 : index
    %c0_21 = arith.constant 0 : index
    %18 = vector.load %arg8[%c0_20, %c0_21] : memref<1x32xf32, #tpu.memory_space<vmem>>, vector<1x32xf32>
    %19 = vector.broadcast %18 : vector<1x32xf32> to vector<8x32xf32>
    %20 = arith.addf %17, %19 : vector<8x32xf32>
    %cst_22 = arith.constant 0.353553385 : f32
    %21 = vector.broadcast %cst_22 : f32 to vector<8x32xf32>
    %22 = arith.mulf %20, %21 : vector<8x32xf32>
    %23 = vector.extract_strided_slice %22 {offsets = [0, 0], sizes = [8, 8], strides = [1, 1]} : vector<8x32xf32> to vector<8x8xf32>
    %24 = vector.extract_strided_slice %10 {offsets = [0, 0], sizes = [8, 8], strides = [1, 1]} : vector<8x32xf32> to vector<8x8xf32>
    %25 = vector.extract_strided_slice %15 {offsets = [0, 0], sizes = [8, 8], strides = [1, 1]} : vector<8x32xf32> to vector<8x8xf32>
    %cst_23 = arith.constant dense<0.000000e+00> : vector<8x8xf32>
    %26 = tpu.matmul %23, %24, %cst_23 {dimension_numbers = #tpu.dot_dimension_numbers<[1], [1], [0], [0], [0, 0, 1, 0], [], []>} : vector<8x8xf32>, vector<8x8xf32>, vector<8x8xf32> -> vector<8x8xf32>
    %cst_24 = arith.constant dense<0xFF800000> : vector<8xf32>
    %27 = vector.multi_reduction <maximumf>, %26, %cst_24 [1] : vector<8x8xf32> to vector<8xf32>
    %28 = vector.shape_cast %27 : vector<8xf32> to vector<8x1xf32>
    %29 = vector.broadcast %28 : vector<8x1xf32> to vector<8x8xf32>
    %30 = arith.subf %26, %29 : vector<8x8xf32>
    %31 = math.exp %30 : vector<8x8xf32>
    %cst_25 = arith.constant dense<0.000000e+00> : vector<8xf32>
    %32 = vector.multi_reduction <add>, %31, %cst_25 [1] : vector<8x8xf32> to vector<8xf32>
    %33 = vector.shape_cast %32 : vector<8xf32> to vector<8x1xf32>
    %34 = tpu.reciprocal %33 : vector<8x1xf32> -> vector<8x1xf32>
    %35 = vector.broadcast %34 : vector<8x1xf32> to vector<8x8xf32>
    %36 = arith.mulf %31, %35 : vector<8x8xf32>
    %c0_26 = arith.constant 0 : index
    %c0_27 = arith.constant 0 : index
    %c0_28 = arith.constant 0 : index
    %c0_29 = arith.constant 0 : index
    %37 = vector.load %arg14[%c0_26, %c0_27, %c0_28, %c0_29] : memref<1x4x8x8xf32, #tpu.memory_space<vmem>>, vector<1x1x8x8xf32>
    %38 = vector.shape_cast %37 : vector<1x1x8x8xf32> to vector<8x8xf32>
    %39 = vector.shape_cast %36 : vector<8x8xf32> to vector<1x1x8x8xf32>
    tpu.vector_store %arg14[%c0_26, %c0_27, %c0_28, %c0_29], %39 {strides = array<i32>} : memref<1x4x8x8xf32, #tpu.memory_space<vmem>>, vector<1x1x8x8xf32>,
    %cst_30 = arith.constant dense<0.000000e+00> : vector<8x8xf32>
    %40 = tpu.matmul %36, %25, %cst_30 {dimension_numbers = #tpu.dot_dimension_numbers<[1], [0], [0], [1], [0, 0, 1, 1], [], []>} : vector<8x8xf32>, vector<8x8xf32>, vector<8x8xf32> -> vector<8x8xf32>
    %c0_31 = arith.constant 0 : index
    %c0_32 = arith.constant 0 : index
    %41 = vector.load %arg15[%c0_31, %c0_32] : memref<8x32xf32, #tpu.memory_space<vmem>>, vector<8x8xf32>
    tpu.vector_store %arg15[%c0_31, %c0_32], %40 {strides = array<i32>} : memref<8x32xf32, #tpu.memory_space<vmem>>, vector<8x8xf32>,
    %42 = vector.extract_strided_slice %22 {offsets = [0, 8], sizes = [8, 8], strides = [1, 1]} : vector<8x32xf32> to vector<8x8xf32>
    %43 = vector.extract_strided_slice %10 {offsets = [0, 8], sizes = [8, 8], strides = [1, 1]} : vector<8x32xf32> to vector<8x8xf32>
    %44 = vector.extract_strided_slice %15 {offsets = [0, 8], sizes = [8, 8], strides = [1, 1]} : vector<8x32xf32> to vector<8x8xf32>
    %cst_33 = arith.constant dense<0.000000e+00> : vector<8x8xf32>
    %45 = tpu.matmul %42, %43, %cst_33 {dimension_numbers = #tpu.dot_dimension_numbers<[1], [1], [0], [0], [0, 0, 1, 0], [], []>} : vector<8x8xf32>, vector<8x8xf32>, vector<8x8xf32> -> vector<8x8xf32>
    %cst_34 = arith.constant dense<0xFF800000> : vector<8xf32>
    %46 = vector.multi_reduction <maximumf>, %45, %cst_34 [1] : vector<8x8xf32> to vector<8xf32>
    %47 = vector.shape_cast %46 : vector<8xf32> to vector<8x1xf32>
    %48 = vector.broadcast %47 : vector<8x1xf32> to vector<8x8xf32>
    %49 = arith.subf %45, %48 : vector<8x8xf32>
    %50 = math.exp %49 : vector<8x8xf32>
    %cst_35 = arith.constant dense<0.000000e+00> : vector<8xf32>
    %51 = vector.multi_reduction <add>, %50, %cst_35 [1] : vector<8x8xf32> to vector<8xf32>
    %52 = vector.shape_cast %51 : vector<8xf32> to vector<8x1xf32>
    %53 = tpu.reciprocal %52 : vector<8x1xf32> -> vector<8x1xf32>
    %54 = vector.broadcast %53 : vector<8x1xf32> to vector<8x8xf32>
    %55 = arith.mulf %50, %54 : vector<8x8xf32>
    %c0_36 = arith.constant 0 : index
    %c1 = arith.constant 1 : index
    %c0_37 = arith.constant 0 : index
    %c0_38 = arith.constant 0 : index
    %56 = vector.load %arg14[%c0_36, %c1, %c0_37, %c0_38] : memref<1x4x8x8xf32, #tpu.memory_space<vmem>>, vector<1x1x8x8xf32>
    %57 = vector.shape_cast %56 : vector<1x1x8x8xf32> to vector<8x8xf32>
    %58 = vector.shape_cast %55 : vector<8x8xf32> to vector<1x1x8x8xf32>
    tpu.vector_store %arg14[%c0_36, %c1, %c0_37, %c0_38], %58 {strides = array<i32>} : memref<1x4x8x8xf32, #tpu.memory_space<vmem>>, vector<1x1x8x8xf32>,
    %cst_39 = arith.constant dense<0.000000e+00> : vector<8x8xf32>
    %59 = tpu.matmul %55, %44, %cst_39 {dimension_numbers = #tpu.dot_dimension_numbers<[1], [0], [0], [1], [0, 0, 1, 1], [], []>} : vector<8x8xf32>, vector<8x8xf32>, vector<8x8xf32> -> vector<8x8xf32>
    %c0_40 = arith.constant 0 : index
    %c8 = arith.constant 8 : index
    %60 = vector.load %arg15[%c0_40, %c8] : memref<8x32xf32, #tpu.memory_space<vmem>>, vector<8x8xf32>
    tpu.vector_store %arg15[%c0_40, %c8], %59 {strides = array<i32>} : memref<8x32xf32, #tpu.memory_space<vmem>>, vector<8x8xf32>,
    %61 = vector.extract_strided_slice %22 {offsets = [0, 16], sizes = [8, 8], strides = [1, 1]} : vector<8x32xf32> to vector<8x8xf32>
    %62 = vector.extract_strided_slice %10 {offsets = [0, 16], sizes = [8, 8], strides = [1, 1]} : vector<8x32xf32> to vector<8x8xf32>
    %63 = vector.extract_strided_slice %15 {offsets = [0, 16], sizes = [8, 8], strides = [1, 1]} : vector<8x32xf32> to vector<8x8xf32>
    %cst_41 = arith.constant dense<0.000000e+00> : vector<8x8xf32>
    %64 = tpu.matmul %61, %62, %cst_41 {dimension_numbers = #tpu.dot_dimension_numbers<[1], [1], [0], [0], [0, 0, 1, 0], [], []>} : vector<8x8xf32>, vector<8x8xf32>, vector<8x8xf32> -> vector<8x8xf32>
    %cst_42 = arith.constant dense<0xFF800000> : vector<8xf32>
    %65 = vector.multi_reduction <maximumf>, %64, %cst_42 [1] : vector<8x8xf32> to vector<8xf32>
    %66 = vector.shape_cast %65 : vector<8xf32> to vector<8x1xf32>
    %67 = vector.broadcast %66 : vector<8x1xf32> to vector<8x8xf32>
    %68 = arith.subf %64, %67 : vector<8x8xf32>
    %69 = math.exp %68 : vector<8x8xf32>
    %cst_43 = arith.constant dense<0.000000e+00> : vector<8xf32>
    %70 = vector.multi_reduction <add>, %69, %cst_43 [1] : vector<8x8xf32> to vector<8xf32>
    %71 = vector.shape_cast %70 : vector<8xf32> to vector<8x1xf32>
    %72 = tpu.reciprocal %71 : vector<8x1xf32> -> vector<8x1xf32>
    %73 = vector.broadcast %72 : vector<8x1xf32> to vector<8x8xf32>
    %74 = arith.mulf %69, %73 : vector<8x8xf32>
    %c0_44 = arith.constant 0 : index
    %c2 = arith.constant 2 : index
    %c0_45 = arith.constant 0 : index
    %c0_46 = arith.constant 0 : index
    %75 = vector.load %arg14[%c0_44, %c2, %c0_45, %c0_46] : memref<1x4x8x8xf32, #tpu.memory_space<vmem>>, vector<1x1x8x8xf32>
    %76 = vector.shape_cast %75 : vector<1x1x8x8xf32> to vector<8x8xf32>
    %77 = vector.shape_cast %74 : vector<8x8xf32> to vector<1x1x8x8xf32>
    tpu.vector_store %arg14[%c0_44, %c2, %c0_45, %c0_46], %77 {strides = array<i32>} : memref<1x4x8x8xf32, #tpu.memory_space<vmem>>, vector<1x1x8x8xf32>,
    %cst_47 = arith.constant dense<0.000000e+00> : vector<8x8xf32>
    %78 = tpu.matmul %74, %63, %cst_47 {dimension_numbers = #tpu.dot_dimension_numbers<[1], [0], [0], [1], [0, 0, 1, 1], [], []>} : vector<8x8xf32>, vector<8x8xf32>, vector<8x8xf32> -> vector<8x8xf32>
    %c0_48 = arith.constant 0 : index
    %c16 = arith.constant 16 : index
    %79 = vector.load %arg15[%c0_48, %c16] : memref<8x32xf32, #tpu.memory_space<vmem>>, vector<8x8xf32>
    tpu.vector_store %arg15[%c0_48, %c16], %78 {strides = array<i32>} : memref<8x32xf32, #tpu.memory_space<vmem>>, vector<8x8xf32>,
    %80 = vector.extract_strided_slice %22 {offsets = [0, 24], sizes = [8, 8], strides = [1, 1]} : vector<8x32xf32> to vector<8x8xf32>
    %81 = vector.extract_strided_slice %10 {offsets = [0, 24], sizes = [8, 8], strides = [1, 1]} : vector<8x32xf32> to vector<8x8xf32>
    %82 = vector.extract_strided_slice %15 {offsets = [0, 24], sizes = [8, 8], strides = [1, 1]} : vector<8x32xf32> to vector<8x8xf32>
    %cst_49 = arith.constant dense<0.000000e+00> : vector<8x8xf32>
    %83 = tpu.matmul %80, %81, %cst_49 {dimension_numbers = #tpu.dot_dimension_numbers<[1], [1], [0], [0], [0, 0, 1, 0], [], []>} : vector<8x8xf32>, vector<8x8xf32>, vector<8x8xf32> -> vector<8x8xf32>
    %cst_50 = arith.constant dense<0xFF800000> : vector<8xf32>
    %84 = vector.multi_reduction <maximumf>, %83, %cst_50 [1] : vector<8x8xf32> to vector<8xf32>
    %85 = vector.shape_cast %84 : vector<8xf32> to vector<8x1xf32>
    %86 = vector.broadcast %85 : vector<8x1xf32> to vector<8x8xf32>
    %87 = arith.subf %83, %86 : vector<8x8xf32>
    %88 = math.exp %87 : vector<8x8xf32>
    %cst_51 = arith.constant dense<0.000000e+00> : vector<8xf32>
    %89 = vector.multi_reduction <add>, %88, %cst_51 [1] : vector<8x8xf32> to vector<8xf32>
    %90 = vector.shape_cast %89 : vector<8xf32> to vector<8x1xf32>
    %91 = tpu.reciprocal %90 : vector<8x1xf32> -> vector<8x1xf32>
    %92 = vector.broadcast %91 : vector<8x1xf32> to vector<8x8xf32>
    %93 = arith.mulf %88, %92 : vector<8x8xf32>
    %c0_52 = arith.constant 0 : index
    %c3 = arith.constant 3 : index
    %c0_53 = arith.constant 0 : index
    %c0_54 = arith.constant 0 : index
    %94 = vector.load %arg14[%c0_52, %c3, %c0_53, %c0_54] : memref<1x4x8x8xf32, #tpu.memory_space<vmem>>, vector<1x1x8x8xf32>
    %95 = vector.shape_cast %94 : vector<1x1x8x8xf32> to vector<8x8xf32>
    %96 = vector.shape_cast %93 : vector<8x8xf32> to vector<1x1x8x8xf32>
    tpu.vector_store %arg14[%c0_52, %c3, %c0_53, %c0_54], %96 {strides = array<i32>} : memref<1x4x8x8xf32, #tpu.memory_space<vmem>>, vector<1x1x8x8xf32>,
    %cst_55 = arith.constant dense<0.000000e+00> : vector<8x8xf32>
    %97 = tpu.matmul %93, %82, %cst_55 {dimension_numbers = #tpu.dot_dimension_numbers<[1], [0], [0], [1], [0, 0, 1, 1], [], []>} : vector<8x8xf32>, vector<8x8xf32>, vector<8x8xf32> -> vector<8x8xf32>
    %c0_56 = arith.constant 0 : index
    %c24 = arith.constant 24 : index
    %98 = vector.load %arg15[%c0_56, %c24] : memref<8x32xf32, #tpu.memory_space<vmem>>, vector<8x8xf32>
    tpu.vector_store %arg15[%c0_56, %c24], %97 {strides = array<i32>} : memref<8x32xf32, #tpu.memory_space<vmem>>, vector<8x8xf32>,
    %c0_57 = arith.constant 0 : index
    %c0_58 = arith.constant 0 : index
    %99 = vector.load %arg15[%c0_57, %c0_58] : memref<8x32xf32, #tpu.memory_space<vmem>>, vector<8x32xf32>
    %c0_59 = arith.constant 0 : index
    %c0_60 = arith.constant 0 : index
    %100 = vector.load %arg11[%c0_59, %c0_60] : memref<32x32xf32, #tpu.memory_space<vmem>>, vector<32x32xf32>
    %cst_61 = arith.constant dense<0.000000e+00> : vector<8x32xf32>
    %101 = tpu.matmul %99, %100, %cst_61 {dimension_numbers = #tpu.dot_dimension_numbers<[1], [0], [0], [1], [0, 0, 1, 1], [], []>} : vector<8x32xf32>, vector<32x32xf32>, vector<8x32xf32> -> vector<8x32xf32>
    %c0_62 = arith.constant 0 : index
    %c0_63 = arith.constant 0 : index
    %102 = vector.load %arg12[%c0_62, %c0_63] : memref<1x32xf32, #tpu.memory_space<vmem>>, vector<1x32xf32>
    %103 = vector.broadcast %102 : vector<1x32xf32> to vector<8x32xf32>
    %104 = arith.addf %101, %103 : vector<8x32xf32>
    %c0_64 = arith.constant 0 : index
    %c0_65 = arith.constant 0 : index
    %c0_66 = arith.constant 0 : index
    %105 = vector.load %arg13[%c0_64, %c0_65, %c0_66] : memref<1x8x32xf32, #tpu.memory_space<vmem>>, vector<1x8x32xf32>
    %106 = vector.shape_cast %105 : vector<1x8x32xf32> to vector<8x32xf32>
    %107 = vector.shape_cast %104 : vector<8x32xf32> to vector<1x8x32xf32>
    tpu.vector_store %arg13[%c0_64, %c0_65, %c0_66], %107 {strides = array<i32>} : memref<1x8x32xf32, #tpu.memory_space<vmem>>, vector<1x8x32xf32>,
    return
  }
  func.func @transform_0(%arg0: i32, %arg1: i32) -> (i32, i32, i32) {
    %c0_i32 = arith.constant 0 : i32
    %c0_i32_0 = arith.constant 0 : i32
    %c0_i32_1 = arith.constant 0 : i32
    return %arg0, %c0_i32, %c0_i32_0 : i32, i32, i32
  }
  func.func @transform_1(%arg0: i32, %arg1: i32) -> (i32, i32, i32) {
    %c0_i32 = arith.constant 0 : i32
    %c0_i32_0 = arith.constant 0 : i32
    %c0_i32_1 = arith.constant 0 : i32
    return %arg0, %c0_i32, %c0_i32_0 : i32, i32, i32
  }
  func.func @transform_2(%arg0: i32, %arg1: i32) -> (i32, i32, i32) {
    %c0_i32 = arith.constant 0 : i32
    %c0_i32_0 = arith.constant 0 : i32
    return %arg0, %arg1, %c0_i32 : i32, i32, i32
  }
  func.func @transform_3(%arg0: i32, %arg1: i32) -> (i32, i32) {
    %c0_i32 = arith.constant 0 : i32
    %c0_i32_0 = arith.constant 0 : i32
    %c0_i32_1 = arith.constant 0 : i32
    return %c0_i32, %c0_i32_0 : i32, i32
  }
  func.func @transform_4(%arg0: i32, %arg1: i32) -> (i32, i32) {
    %c0_i32 = arith.constant 0 : i32
    %c0_i32_0 = arith.constant 0 : i32
    %c0_i32_1 = arith.constant 0 : i32
    return %c0_i32, %c0_i32_0 : i32, i32
  }
  func.func @transform_5(%arg0: i32, %arg1: i32) -> (i32, i32) {
    %c0_i32 = arith.constant 0 : i32
    %c0_i32_0 = arith.constant 0 : i32
    %c0_i32_1 = arith.constant 0 : i32
    return %c0_i32, %c0_i32_0 : i32, i32
  }
  func.func @transform_6(%arg0: i32, %arg1: i32) -> (i32, i32) {
    %c0_i32 = arith.constant 0 : i32
    %c0_i32_0 = arith.constant 0 : i32
    %c0_i32_1 = arith.constant 0 : i32
    return %c0_i32, %c0_i32_0 : i32, i32
  }
  func.func @transform_7(%arg0: i32, %arg1: i32) -> (i32, i32) {
    %c0_i32 = arith.constant 0 : i32
    %c0_i32_0 = arith.constant 0 : i32
    %c0_i32_1 = arith.constant 0 : i32
    return %c0_i32, %c0_i32_0 : i32, i32
  }
  func.func @transform_8(%arg0: i32, %arg1: i32) -> (i32, i32) {
    %c0_i32 = arith.constant 0 : i32
    %c0_i32_0 = arith.constant 0 : i32
    %c0_i32_1 = arith.constant 0 : i32
    return %c0_i32, %c0_i32_0 : i32, i32
  }
  func.func @transform_9(%arg0: i32, %arg1: i32) -> (i32, i32) {
    %c0_i32 = arith.constant 0 : i32
    %c0_i32_0 = arith.constant 0 : i32
    %c0_i32_1 = arith.constant 0 : i32
    return %c0_i32, %c0_i32_0 : i32, i32
  }
  func.func @transform_10(%arg0: i32, %arg1: i32) -> (i32, i32) {
    %c0_i32 = arith.constant 0 : i32
    %c0_i32_0 = arith.constant 0 : i32
    %c0_i32_1 = arith.constant 0 : i32
    return %c0_i32, %c0_i32_0 : i32, i32
  }
  func.func @transform_11(%arg0: i32, %arg1: i32) -> (i32, i32, i32) {
    %c0_i32 = arith.constant 0 : i32
    %c0_i32_0 = arith.constant 0 : i32
    return %arg0, %arg1, %c0_i32 : i32, i32, i32
  }
  func.func @transform_12(%arg0: i32, %arg1: i32) -> (i32, i32, i32, i32) {
    %c0_i32 = arith.constant 0 : i32
    %c0_i32_0 = arith.constant 0 : i32
    %c0_i32_1 = arith.constant 0 : i32
    return %arg0, %c0_i32, %arg1, %c0_i32_0 : i32, i32, i32, i32
  }
}

</mosaic_0001>

<bundles_post_ra>
// kernel: tpu_custom_call.1
= control target key start
LH: loop header
LB: loop body
LE: loop exit
PB: predicated region body
PF: predicated region fallthrough
CT: control target
= control target key end

     0   :  { %s2230_s0 = inlined_call_operand.hbm [shape: f32[2,8,32], index: 0, kind: input, shape index: {}]   ;;  %s2231_s1 = inlined_call_operand.hbm [shape: f32[2,8,32], index: 1, kind: input, shape index: {}]   ;;  %s2232_s2 = inlined_call_operand.hbm [shape: f32[2,8,32], index: 2, kind: input, shape index: {}]   ;;  %s2233_s3 = inlined_call_operand.hbm [shape: f32[32,32], index: 3, kind: input, shape index: {}]   ;;  %s2234_s4 = inlined_call_operand.vmem [shape: f32[1,32], index: 4, kind: input, shape index: {}]   ;;  %s2235_s5 = inlined_call_operand.hbm [shape: f32[32,32], index: 5, kind: input, shape index: {}]   ;;  %s2236_s6 = inlined_call_operand.vmem [shape: f32[1,32], index: 6, kind: input, shape index: {}]   ;;  %s2237_s7 = inlined_call_operand.hbm [shape: f32[32,32], index: 7, kind: input, shape index: {}]   ;;  %s2238_s8 = inlined_call_operand.vmem [shape: f32[1,32], index: 8, kind: input, shape index: {}]   ;;  %s2239_s9 = inlined_call_operand.hbm [shape: f32[32,32], index: 9, kind: input, shape index: {}]   ;;  %s2240_s10 = inlined_call_operand.vmem [shape: f32[1,32], index: 10, kind: input, shape index: {}]   ;;  %s2241_s11 = inlined_call_operand.hbm [shape: f32[2,8,32], index: 11, kind: output, shape index: {0}]   ;;  %s2242_s12 = inlined_call_operand.hbm [shape: f32[2,4,8,8], index: 12, kind: output, shape index: {1}]  }
   0x1   :  { %2256 = sst [smem:[#allocation30_spill]] %s2230_s0 }
   0x2   :  { %2257 = sst [smem:[#allocation31_spill]] %s2231_s1 }
   0x3   :  { %2258 = sst [smem:[#allocation32_spill]] %s2233_s3 }
   0x4   :  { %2259 = sst [smem:[#allocation33_spill]] %s2235_s5 }
   0x5   :  { %2260 = sst [smem:[#allocation34_spill]] %s2237_s7 }
   0x6   :  { %2261 = sst [smem:[#allocation35_spill]] %s2239_s9 }
   0x7   :  { %2262 = sst [smem:[#allocation36_spill]] %s2240_s10 }
   0x8   :  { %2263 = sst [smem:[#allocation37_spill]] %s2241_s11 }
   0x9   :  { %2264 = sst [smem:[#allocation38_spill]] %s2242_s12 }
   0xa   :  { %18 = vsyncpa [#allocation4], 0 }
   0xb   :  { %20 = vsyncpa [#allocation4 + $0x1], 0 }
   0xc   :  { %21 = vsyncpa [#allocation7], 0 }
   0xd   :  { %23 = vsyncpa [#allocation7 + $0x1], 0 }
   0xe   :  { %24 = vsyncpa [#allocation10], 0 }
   0xf   :  { %25 = vsyncpa [#allocation13], 0 }
  0x10   :  { %26 = vsyncpa [#allocation5], 0 }
  0x11   :  { %28 = vsyncpa [#allocation5 + $0x1], 0 }
  0x12   :  { %29 = vsyncpa [#allocation17], 0 }
  0x13   :  { %31 = vsyncpa [#allocation17 + $0x1], 0  ;;  %s1918_s21 = smov 0   ;;  %s1920_s22 = smov 0  }
  0x14   :  { %s1922_s23 = smov 0   ;;  %s1924_s24 = smov 0  }
  0x15   :  { %s1926_s25 = smov 0   ;;  %s1928_s26 = smov 0  }
  0x16 LB: > { %2265 = sst [smem:[#allocation24_spill]] %s1818_s21  ;;  %s1949_s27 = sadd.s32 4294967295, %s1838_s26   ;;  %s1838_s26 = sphi %s1928_s26, %s37_s26   ;;  %s1834_s25 = sphi %s1926_s25, %s2295_s25   ;;  %s1830_s24 = sphi %s1924_s24, %s2294_s24   ;;  %s1826_s23 = sphi %s1922_s23, %s2298_s23   ;;  %s1822_s22 = sphi %s1920_s22, %s2297_s22   ;;  %s1818_s21 = sphi %s1918_s21, %s2296_s21  }
  0x17   : > { %2266 = sst [smem:[#allocation25_spill]] %s1834_s25  ;;  %p1306_p0 = scmp.ge.s32.totalorder %s1838_s26, 1 }
  0x18   : > { %2267 = sst [smem:[#allocation26_spill]] %s1838_s26  ;;  %p70_p1 = scmp.eq.s32.totalorder %s1949_s27, 0 }
  0x19   : > { %p358_p2 = scmp.lt.s32.totalorder %s1838_s26, 3  ;;  %s2268_s3 = sld [smem:[#allocation32_spill]] }
  0x1a   : > { %s1840_s14 = smov [#allocation9]   ;;  %p1311_p6 = scmp.ge.s32.totalorder %s1838_s26, 2 }
  0x1b   : > { %p1957_p3 = pnand %p1306_p0, %p358_p2  ;;  %s371_s15 = sshll.u32 %s1840_s14, 4  ;;  %s372_s15 = int_to_ptr.vmem [resolvable:$true] %s371_s15 }
  0x1c   : > { %s2271_s7 = sld [smem:[#allocation34_spill]]  ;;  %s2243_s20 = smov 128  }
  0x1d   : > { %p1381_p4 = pneg %p1957_p3  ;;  %s2245_s28 = smov 8  }
  0x1e   : > { %s1843_s29 = smov [#allocation12]   ;;  %s1305_s17 = sadd.s32 4294967294, %s1838_s26  }
  0x1f   : > { %s369_s30 = sshll.u32 %s2268_s3, 4  ;;  %p1965_p5 = pnand %p1381_p4, %p70_p1  ;;  %s370_s30 = int_to_ptr.hbm [resolvable:$true] %s369_s30 }
  0x20   : > { %s405_s14 = sshll.u32 %s1843_s29, 4  ;;  %s49_s18 = sadd.s32 1, %s1834_s25  ;;  %s406_s14 = int_to_ptr.vmem [resolvable:$true] %s405_s14 }
  0x21   : > { %1384 = dma.hbm_to_vmem [thread:$0]  (!%p1965_p5), %s370_s30, 512, %s372_s15, [#allocation10], %s2243_s20, %s2243_s20, %s2245_s28  }
  0x22   : > { %s403_s19 = sshll.u32 %s2271_s7, 4  ;;  %p51_p7 = scmp.ge.s32.totalorder %s49_s18, 2  ;;  %s404_s19 = int_to_ptr.hbm [resolvable:$true] %s403_s19 }
  0x23   : > { %1390 = dma.hbm_to_vmem [thread:$0]  (!%p1965_p5), %s404_s19, 512, %s406_s14, [#allocation13], %s2243_s20, %s2243_s20, %s2245_s28  }
  0x24   : > { %s56_s3 = sadd.s32 1, %s1826_s23  ;;  %p63_p8 = scmp.ne.s32.totalorder %s1826_s23, %s1822_s22 }
  0x25   : > { %p64_p9 = scmp.eq.s32.totalorder %s1838_s26, 0  ;;  %s2300_s18 = smov (%p51_p7, %s49_s18), 0 }
  0x26   : > { %2272 = sst [smem:[#allocation27_spill]] %s2300_s18  ;;  %p69_p11 = scmp.ne.s32.totalorder %s1822_s22, %s1818_s21 }
  0x27   : > { %p1991_p10 = por %p64_p9, %p63_p8  ;;  %s53_s15 = ssub.s32 %s1834_s25, %s2300_s18 }
  0x28   : > { %p317_p12 = scmp.eq.s32.totalorder %s1949_s27, 1  ;;  %p54_p13 = scmp.eq.s32.totalorder %s53_s15, 0 }
  0x29   : > { %p2002_p0 = por %p70_p1, %p69_p11  ;;  %p323_p4 = scmp.eq.s32.totalorder %s1305_s17, 1 }
  0x2a   : > { %p2006_p2 = por %p317_p12, %p63_p8  ;;  %p1415_p9 = scmp.lt.s32.totalorder %s1838_s26, 2 }
  0x2b   : > { %s2011_s14 = scalar_select %p54_p13, %s1826_s23, %s56_s3  }
  0x2c   : > { %p2013_p7 = por %p323_p4, %p69_p11  ;;  %s2251_s28 = sand.u32 1, %s1826_s23  }
  0x2d   : > { %2276 = sst [smem:[#allocation28_spill]] %s2011_s14  ;;  %s2020_s7 = sshll.u32 %s1834_s25, 3 }
  0x2e   : > { %s2277_s20 = scalar_select %p2013_p7, 1, 0 }
  0x2f   : > { %s2024_s15 = sshll.u32 %s2251_s28, 3  ;;  %p2028_p8 = pnand %p1415_p9, %p1991_p10 }
  0x30   : > { %2278 = sst [smem:[#allocation29_spill]] %s2277_s20  ;;  %s458_s3 = sand.u32 1, %s1838_s26  }
  0x31   : > { %s2280_s1 = sld [smem:[#allocation31_spill]]  ;;  %s462_s21 = scalar_lea.vmem [#allocation6], %s2024_s15 }
  0x32   : > { %s470_s25 = sshll.u32 %s462_s21, 4  ;;  %s2281_s5 = sld [smem:[#allocation33_spill]]  ;;  %s471_s25 = int_to_ptr.vmem [resolvable:$true] %s470_s25 }
  0x33   : > { %s459_s12 = scalar_lea.sflag [#allocation7], %s458_s3  ;;  %s1844_s26 = smov [#allocation11]  }
  0x34   : > { %s388_s14 = sshll.u32 %s1844_s26, 4  ;;  %s2282_s9 = sld [smem:[#allocation35_spill]]  ;;  %s389_s14 = int_to_ptr.vmem [resolvable:$true] %s388_s14 }
  0x35   : > { %s2284_s28 = smov 128   ;;  %s1845_s3 = smov [#allocation14]  }
  0x36   : > { %s2285_s0 = sld [smem:[#allocation30_spill]]  ;;  %s443_s17 = scalar_lea.vmem [#allocation3], %s2024_s15 }
  0x37   : > { %s466_s20 = scalar_lea.hbm %s2280_s1, %s2020_s7 }
  0x38   : > { %s468_s10 = sshll.u32 %s466_s20, 4  ;;  %s386_s11 = sshll.u32 %s2281_s5, 4  ;;  %s469_s10 = int_to_ptr.hbm [resolvable:$true] %s468_s10  ;;  %s387_s11 = int_to_ptr.hbm [resolvable:$true] %s386_s11 }
  0x39   : > { %1400 = dma.hbm_to_vmem [thread:$0]  (!%p2028_p8), %s469_s10, 128, %s471_s25, %s459_s12  }
  0x3a   : > { %s420_s21 = sshll.u32 %s2282_s9, 4  ;;  %s2283_s20 = smov 8   ;;  %s421_s21 = int_to_ptr.hbm [resolvable:$true] %s420_s21 }
  0x3b   : > { %1387 = dma.hbm_to_vmem [thread:$0]  (!%p1965_p5), %s387_s11, 512, %s389_s14, [#allocation10], %s2284_s28, %s2284_s28, %s2283_s20  }
  0x3c   : > { %s422_s10 = sshll.u32 %s1845_s3, 4  ;;  %s447_s26 = scalar_lea.hbm %s2285_s0, %s2020_s7  ;;  %s423_s10 = int_to_ptr.vmem [resolvable:$true] %s422_s10 }
  0x3d   : > { %1393 = dma.hbm_to_vmem [thread:$0]  (!%p1965_p5), %s421_s21, 512, %s423_s10, [#allocation13], %s2284_s28, %s2284_s28, %s2283_s20  }
  0x3e   : > { %s449_s1 = sshll.u32 %s447_s26, 4  ;;  %s451_s5 = sshll.u32 %s443_s17, 4  ;;  %s450_s1 = int_to_ptr.hbm [resolvable:$true] %s449_s1  ;;  %s452_s5 = int_to_ptr.vmem [resolvable:$true] %s451_s5 }
  0x3f   : > { %s2286_s9 = sand.u32 1, %s1826_s23   ;;  %s486_s25 = scalar_lea.hbm %s2232_s2, %s2020_s7 }
  0x40   : > { %s440_s11 = scalar_lea.sflag [#allocation4], %s2286_s9  ;;  %s488_s30 = sshll.u32 %s486_s25, 4  ;;  %s489_s30 = int_to_ptr.hbm [resolvable:$true] %s488_s30 }
  0x41   : > { %1397 = dma.hbm_to_vmem [thread:$0]  (!%p2028_p8), %s450_s1, 128, %s452_s5, %s440_s11  }
  0x42   : > { %s481_s0 = scalar_lea.vmem [#allocation8], %s2024_s15  ;;  %499 = sbr.rel (%p1957_p3) target bundleno = 1129 (0x469), region = 64 }
  0x43   : > { %s490_s16 = sshll.u32 %s481_s0, 4  ;;  %s2075_s21 = sand.u32 (!%p1957_p3), 1, %s1822_s22   ;;  %s491_s16 = int_to_ptr.vmem [resolvable:$true] %s490_s16 }
  0x44   : > { %1403 = dma.hbm_to_vmem [thread:$0]  (!%p2028_p8), %s489_s30, 128, %s491_s16, %s459_s12  }
  0x45   : > { %s2078_s5 = sshll.u32 (!%p1957_p3), %s2075_s21, 3  ;;  %s502_s7 = scalar_lea.sflag (!%p1957_p3), [#allocation4], %s2075_s21 }
  0x46   : > { %s505_s9 = scalar_lea.vmem (!%p1957_p3), [#allocation3], %s2078_s5 }
  0x47   : > { %1793 = dma.done.wait (%p2002_p0), %s502_s7, 128  }
  0x48   : > { %1795 = vsyncadd (%p2002_p0), %s502_s7, 4294967168  ;;  %s511_s0 = sand.u32 1, %s1949_s27   ;;  %s515_s13 = scalar_lea.vmem [#allocation6], %s2078_s5 }
  0x49   : > { %s512_s12 = scalar_lea.sflag [#allocation7], %s511_s0 }
  0x4a   : > { %1797 = dma.done.wait (%p2002_p0), %s512_s12, 256  }
  0x4b   : > { %1799 = vsyncadd (%p2002_p0), %s512_s12, 4294967040  ;;  %s525_s18 = scalar_lea.vmem [#allocation8], %s2078_s5 }
  0x4c   : > { %1801 = dma.done.wait (%p70_p1), [#allocation10], 1024  }
  0x4d   : > { %1803 = vsyncadd (%p70_p1), [#allocation10], 4294966272 }
  0x4e   : > { %1805 = dma.done.wait (%p70_p1), [#allocation13], 1024  }
  0x4f   : > { %1807 = vsyncadd (%p70_p1), [#allocation13], 4294966272  ;;  %v608_v0 = vld [vmem:[#allocation9 + $0x18] sm:$0xff]  ;;  %v607_v2 = vld [vmem:[#allocation9 + $0x10] sm:$0xff]  ;;  %vm613_vm0 = vcmask 261120   ;;  %vm700_vm1 = vcmask 64512  }
  0x50   : > { %v671_v1 = vld [vmem:[#allocation11 + $0x18] sm:$0xff]  ;;  %629 = vmatpush.msra.mxu0 %v608_v0  ;;  %v670_v3 = vld [vmem:[#allocation11 + $0x10] sm:$0xff]  ;;  %v606_v4 = vld [vmem:[#allocation9 + $0x8] sm:$0xff]  ;;  %s1846_s15 = smov 104   ;;  %s1847_s20 = smov 120  }
  0x51   : > { %691 = vmatpush.msra.mxu2 %v671_v1  ;;  %v669_v5 = vld [vmem:[#allocation11 + $0x8] sm:$0xff]  ;;  %v605_v6 = vld [vmem:[#allocation9] sm:$0xff]  ;;  %v602_v8 = vld [vmem:[%s505_s9] sm:$0xff]  ;;  %s1848_s26 = smov 112   ;;  %s1327_s11 = sshll.u32 %s2075_s21, 5 }
  0x52   : > { %630 = vmatpush.msra.mxu0 %v607_v2  ;;  %v668_v7 = vld [vmem:[#allocation11] sm:$0xff]  ;;  %v604_v9 = vld [vmem:[%s525_s18] sm:$0xff]  ;;  %v1482_v10 = vld [vmem:[%s2234_s4] ss:$0 sm:$0xff]  ;;  %s2148_s14 = scalar_lea.vmem [#allocation16], %s1327_s11  ;;  %s1849_s3 = smov 8  }
  0x53   : > { %692 = vmatpush.msra.mxu2 %v670_v3  ;;  %v1483_v13 = vld [vmem:[%s2236_s6] ss:$0 sm:$0xff]  ;;  %v640_v25 = vld [vmem:[#allocation12 + $0x18] sm:$0xff]  ;;  %v639_v26 = vld [vmem:[#allocation12 + $0x10] sm:$0xff]  ;;  %s1850_s25 = smov 16   ;;  %s1851_s30 = smov 24  }
  0x54   : > { %631 = vmatpush.msra.mxu0 %v606_v4  ;;  %660 = vmatpush.msra.mxu1 %v640_v25  ;;  %v638_v27 = vld [vmem:[#allocation12 + $0x8] sm:$0xff]  ;;  %v637_v28 = vld [vmem:[#allocation12] sm:$0xff]  ;;  %s1354_s16 = sshll.u32 %s1830_s24, 5  ;;  %s2287_s0 = sld [smem:[#allocation38_spill]] }
  0x55   : > { %693 = vmatpush.msra.mxu2 %v669_v5  ;;  %v603_v29 = vld [vmem:[%s515_s13] sm:$0xff]  ;;  %s1102_s13 = sshll.u32 %s2148_s14, 4  ;;  %s1074_s27 = scalar_lea.sflag [#allocation17], %s2075_s21  ;;  %s1103_s13 = int_to_ptr.vmem [resolvable:$true] %s1102_s13 }
  0x56   : > { %632 = vmatpush.msra.mxu0 %v605_v6  ;;  %661 = vmatpush.msra.mxu1 %v639_v26  ;;  %v1484_v43 = vld [vmem:[%s2238_s8] ss:$0 sm:$0xff] }
  0x57   : > { %694 = vmatpush.msra.mxu2 %v668_v7  ;;  %1328 = vmatmul.msk.f32.vlgmr.msra.gmra.mxu0 %vm613_vm0, %v602_v8 }
  0x58   : > { %1330 = vmatmul.msk.f32.vlgmr.msra.gmra.mxu2 %vm613_vm0, %v604_v9  ;;  %662 = vmatpush.msra.mxu1 %v638_v27 }
  0x5a   : > { %663 = vmatpush.msra.mxu1 %v637_v28  ;;  %s1101_s12 = scalar_lea.hbm %s2287_s0, %s1354_s16  ;;  %s1732_s10 = scalar_lea.hbm %s2287_s0, 64 }
  0x5b   : > { %1329 = vmatmul.msk.f32.vlgmr.msra.gmra.mxu1 %vm613_vm0, %v603_v29  ;;  %s1104_s18 = sshll.u32 %s1101_s12, 4  ;;  %s1105_s18 = int_to_ptr.hbm [resolvable:$true] %s1104_s18 }
  0x5c   : > { %s1726_s19 = sshra.s32 %s1105_s18, 4  ;;  %s1727_s19 = int_to_ptr.hbm [resolvable:$true] %s1726_s19 }
  0x5d   : > { %p1733_p10 = scmp.lt.s32.totalorder %s1727_s19, %s2287_s0 }
  0xd4   : > { %v634_v11 = vpop.f32.mrf.mxu0 }
  0xd5   : > { %v635_v12 = vadd.f32 %v1482_v10, %v634_v11 }
  0xd7   : > { %951 = vrot.lane.b32.xlu2 %v635_v12, %s1846_s15  ;;  %778 = vrot.lane.b32.xlu1 %v635_v12, %s1847_s20 }
  0xd8   : > { %865 = vrot.lane.b32.xlu0 %v635_v12, %s1848_s26  ;;  %1331 = vmatpush.xpose.msk.msra.mxu3 %vm700_vm1, %v635_v12  ;;  %v665_v45 = vpop.f32.mrf.mxu1 }
  0xd9   : > { %v666_v46 = vadd.f32 %v1484_v43, %v665_v45 }
  0xdb   : > { %v696_v14 = vpop.f32.mrf.mxu2 }
  0xdc   : > { %v697_v15 = vadd.f32 %v1483_v13, %v696_v14  ;;  %770 = vmatpush.msrb.mxu3 %v666_v46 }
  0xde   : > { %v699_v16 = vmul.f32 0.35355338, %v697_v15 }
  0xe0   : > { %949 = vrot.lane.b32.xlu2 %v699_v16, %s1846_s15  ;;  %776 = vrot.lane.b32.xlu1 %v699_v16, %s1847_s20 }
  0xe1   : > { %863 = vrot.lane.b32.xlu0 %v699_v16, %s1848_s26  ;;  %1332 = vmatmul.msk.f32.vlgmr.msra.gmra.mxu3 %vm700_vm1, %v699_v16 }
 0x131   : > { %v952_v18 = vpop.permute.xlu2 %951 }
 0x13a   : > { %v950_v22 = vpop.permute.xlu2 %949 }
 0x149   : > { %v779_v17 = vpop.permute.xlu1 %778 }
 0x14a   : > { %v866_v19 = vpop.permute.xlu0 %865  ;;  %1334 = vmatpush.xpose.msk.msrb.mxu0 %vm700_vm1, %v779_v17 }
 0x14b   : > { %1338 = vmatpush.xpose.msk.msrb.mxu2 %vm700_vm1, %v866_v19 }
 0x14e   : > { %1342 = vmatpush.xpose.msk.msra.mxu0 %vm700_vm1, %v952_v18 }
 0x152   : > { %v777_v20 = vpop.permute.xlu1 %776 }
 0x153   : > { %v864_v21 = vpop.permute.xlu0 %863  ;;  %1335 = vmatmul.msk.f32.vlgmr.msrb.gmra.mxu0 %vm700_vm1, %v777_v20 }
 0x154   : > { %1339 = vmatmul.msk.f32.vlgmr.msrb.gmra.mxu2 %vm700_vm1, %v864_v21 }
 0x15b   : > { %1343 = vmatmul.msk.f32.vlgmr.msra.gmra.mxu0 %vm700_vm1, %v950_v22 }
 0x164   : > { %v724_v23 = vpop.f32.mrf.mxu3 }
 0x165   : > { %v727_v24 = vsel %vm700_vm1, %v724_v23, -inf }
 0x166   : > { %728 = vmax.xlane.f32.xlu0 %v727_v24 }
 0x1d0   : > { %v801_v30 = vpop.f32.mrf.mxu0 }
 0x1d1   : > { %v804_v31 = vsel %vm700_vm1, %v801_v30, -inf }
 0x1d2   : > { %805 = vmax.xlane.f32.xlu1 %v804_v31 }
 0x1d7   : > { %v888_v32 = vpop.f32.mrf.mxu2 }
 0x1d8   : > { %v891_v33 = vsel %vm700_vm1, %v888_v32, -inf  ;;  %v974_v37 = vpop.f32.mrf.mxu0 }
 0x1d9   : > { %892 = vmax.xlane.f32.xlu2 %v891_v33  ;;  %v729_v34 = vpop.xlane.xlu0 %728  ;;  %v977_v38 = vsel %vm700_vm1, %v974_v37, -inf }
 0x1da   : > { %v730_v35 = vsub.f32 %v724_v23, %v729_v34 }
 0x1dc   : > { %v731_v36 = vmul.f32 1.442695, %v730_v35 }
 0x1de   : > { %1486 = vpow2.f32 %v731_v36 }
 0x1e1   : > { %978 = vmax.xlane.f32.xlu2 %v977_v38 }
 0x1e4   : > { %v1487_v39 = vpop.eup %1486 }
 0x1e5   : > { %v733_v40 = vsel %vm700_vm1, %v1487_v39, 0.0 }
 0x1e6   : > { %734 = vadd.xlane.f32.xlu0 %v733_v40 }
 0x245   : > { %v806_v41 = vpop.xlane.xlu1 %805 }
 0x246   : > { %v807_v42 = vsub.f32 %v801_v30, %v806_v41 }
 0x248   : > { %v808_v44 = vmul.f32 1.442695, %v807_v42 }
 0x24a   : > { %1488 = vpow2.f32 %v808_v44 }
 0x24c   : > { %v893_v47 = vpop.xlane.xlu2 %892 }
 0x24d   : > { %v894_v48 = vsub.f32 %v888_v32, %v893_v47 }
 0x24f   : > { %v895_v49 = vmul.f32 1.442695, %v894_v48 }
 0x250   : > { %v2134_v50 = vpop.eup %1488 }
 0x251   : > { %1490 = vpow2.f32 %v895_v49  ;;  %v810_v51 = vsel %vm700_vm1, %v2134_v50, 0.0 }
 0x252   : > { %811 = vadd.xlane.f32.xlu1 %v810_v51  ;;  %v1038_v51 = vld [vmem:[#allocation14 + $0x10] sm:$0xff] }
 0x254   : > { %v979_v52 = vpop.xlane.xlu2 %978 }
 0x255   : > { %v980_v53 = vsub.f32 %v974_v37, %v979_v52  ;;  %v1037_v52 = vld [vmem:[#allocation14 + $0x8] sm:$0xff] }
 0x257   : > { %v2138_v54 = vpop.eup %1490  ;;  %v981_v55 = vmul.f32 1.442695, %v980_v53  ;;  %v1036_v53 = vld [vmem:[#allocation14] sm:$0xff] }
 0x258   : > { %v897_v56 = vsel %vm700_vm1, %v2138_v54, 0.0 }
 0x259   : > { %1492 = vpow2.f32 %v981_v55  ;;  %898 = vadd.xlane.f32.xlu2 %v897_v56  ;;  %v735_v57 = vpop.xlane.xlu0 %734 }
 0x25a   : > { %1494 = vrcp.f32 %v735_v57  ;;  %v747_v63 = vand.u32 2147483648, %v735_v57  ;;  %v745_v1 = vand.u32 2147483647, %v735_v57  ;;  %vm741_vm3 = vweird.f32 %v735_v57 }
 0x25c   : > { %v748_v3 = vor.u32 1.1754944e-38, %v747_v63  ;;  %vm746_vm5 = vcmp.eq.f32.partialorder %v745_v1, 8.507059e+37 }
 0x25f   : > { %v2142_v58 = vpop.eup %1492 }
 0x260   : > { %v1495_v59 = vpop.eup %1494  ;;  %v983_v60 = vsel %vm700_vm1, %v2142_v58, 0.0 }
 0x261   : > { %v737_v61 = vmul.f32 %v1495_v59, %v735_v57  ;;  %984 = vadd.xlane.f32.xlu0 %v983_v60  ;;  %vm742_vm2 = vweird.f32 %v1495_v59 }
 0x262   : > { %vm743_vm4 = vmor %vm741_vm3, %vm742_vm2 }
 0x263   : > { %v738_v62 = vsub.f32 1.0, %v737_v61 }
 0x265   : > { %v739_v0 = vmul.f32 %v1495_v59, %v738_v62 }
 0x267   : > { %v740_v2 = vadd.f32 %v1495_v59, %v739_v0 }
 0x269   : > { %v744_v4 = vsel %vm743_vm4, %v1495_v59, %v740_v2  ;;  %vm947_vm4 = vcmask 195712  }
 0x26a   : > { %v749_v5 = vsel %vm746_vm5, %v748_v3, %v744_v4  ;;  %vm1033_vm5 = vcmask 261312  }
 0x26b   : > { %831 = vrot.lane.b32.xlu1 %v666_v46, %s1847_s20  ;;  %v750_v6 = vmul.f32 %v1487_v39, %v749_v5 }
 0x26d   : > { %751 = vst.msk [vmem:[%s2148_s14] sm:$0xff] %vm700_vm1, %v750_v6  ;;  %1333 = vmatmul.msk.f32.vlgmr.msrb.gmra.mxu3 %vm700_vm1, %v750_v6 }
 0x271   : > { %917 = vrot.lane.b32.xlu2 %v666_v46, %s1848_s26 }
 0x275   : > { %1003 = vrot.lane.b32.xlu0 %v666_v46, %s1846_s15  ;;  %s1728_s15 = scalar_lea.hbm %s1727_s19, 32 }
 0x276   : > { %p1729_p1 = scmp.ne.s32.totalorder %s1727_s19, %s1728_s15  ;;  %p1734_p11 = scmp.lt.s32.totalorder %s1732_s10, %s1728_s15 }
 0x278   : > { %p1730_p3 = pnand %p1729_p1, %p2006_p2  ;;  %p1735_p12 = por %p1734_p11, %p1733_p10 }
 0x27a   : > { %p1731_p5 = pneg %p1730_p3 }
 0x27c   : > { %p1736_p13 = pnand %p1735_p12, %p1731_p5 }
 0x2c5   : > { %v812_v7 = vpop.xlane.xlu1 %811 }
 0x2c6   : > { %1496 = vrcp.f32 %v812_v7  ;;  %v824_v13 = vand.u32 2147483648, %v812_v7  ;;  %v822_v14 = vand.u32 2147483647, %v812_v7  ;;  %vm818_vm7 = vweird.f32 %v812_v7 }
 0x2c8   : > { %v825_v20 = vor.u32 1.1754944e-38, %v824_v13  ;;  %vm823_vm9 = vcmp.eq.f32.partialorder %v822_v14, 8.507059e+37 }
 0x2cc   : > { %v1497_v8 = vpop.eup %1496  ;;  %v899_v9 = vpop.xlane.xlu2 %898 }
 0x2cd   : > { %v814_v10 = vmul.f32 %v1497_v8, %v812_v7  ;;  %1498 = vrcp.f32 %v899_v9  ;;  %vm819_vm6 = vweird.f32 %v1497_v8  ;;  %v911_v23 = vand.u32 2147483648, %v899_v9 }
 0x2ce   : > { %vm820_vm8 = vmor %vm818_vm7, %vm819_vm6  ;;  %v909_v26 = vand.u32 2147483647, %v899_v9  ;;  %vm905_vm11 = vweird.f32 %v899_v9 }
 0x2cf   : > { %v815_v11 = vsub.f32 1.0, %v814_v10  ;;  %v912_v30 = vor.u32 1.1754944e-38, %v911_v23 }
 0x2d0   : > { %vm910_vm13 = vcmp.eq.f32.partialorder %v909_v26, 8.507059e+37 }
 0x2d1   : > { %v816_v12 = vmul.f32 %v1497_v8, %v815_v11 }
 0x2d3   : > { %v1499_v15 = vpop.eup %1498  ;;  %v817_v16 = vadd.f32 %v1497_v8, %v816_v12 }
 0x2d4   : > { %v901_v17 = vmul.f32 %v1499_v15, %v899_v9  ;;  %v918_v18 = vpop.permute.xlu2 %917  ;;  %v985_v19 = vpop.xlane.xlu0 %984  ;;  %vm906_vm10 = vweird.f32 %v1499_v15 }
 0x2d5   : > { %1500 = vrcp.f32 %v985_v19  ;;  %938 = vmatpush.msra.mxu3 %v918_v18  ;;  %v821_v22 = vsel %vm820_vm8, %v1497_v8, %v817_v16  ;;  %vm907_vm12 = vmor %vm905_vm11, %vm906_vm10  ;;  %v997_v37 = vand.u32 2147483648, %v985_v19  ;;  %v995_v39 = vand.u32 2147483647, %v985_v19 }
 0x2d6   : > { %v902_v21 = vsub.f32 1.0, %v901_v17  ;;  %v826_v24 = vsel %vm823_vm9, %v825_v20, %v821_v22  ;;  %vm991_vm15 = vweird.f32 %v985_v19 }
 0x2d7   : > { %v827_v27 = vmul.f32 %v2134_v50, %v826_v24  ;;  %v998_v41 = vor.u32 1.1754944e-38, %v997_v37  ;;  %vm996_vm3 = vcmp.eq.f32.partialorder %v995_v39, 8.507059e+37  ;;  %v1039_v50 = vld [vmem:[#allocation14 + $0x18] sm:$0xff] }
 0x2d8   : > { %v903_v25 = vmul.f32 %v1499_v15, %v902_v21  ;;  %1059 = vmatpush.msra.mxu2 %v1039_v50 }
 0x2d9   : > { %1336 = vst.msk [vmem:[%s2148_s14 + $0x8] sm:$0xff] %vm700_vm1, %v827_v27 }
 0x2da   : > { %v904_v28 = vadd.f32 %v1499_v15, %v903_v25  ;;  %1060 = vmatpush.msra.mxu2 %v1038_v51 }
 0x2db   : > { %v1501_v29 = vpop.eup %1500 }
 0x2dc   : > { %v908_v31 = vsel %vm907_vm12, %v1499_v15, %v904_v28  ;;  %v987_v32 = vmul.f32 %v1501_v29, %v985_v19  ;;  %vm992_vm14 = vweird.f32 %v1501_v29  ;;  %1061 = vmatpush.msra.mxu2 %v1037_v52 }
 0x2dd   : > { %v913_v33 = vsel %vm910_vm13, %v912_v30, %v908_v31  ;;  %v832_v34 = vpop.permute.xlu1 %831  ;;  %vm993_vm2 = vmor %vm991_vm15, %vm992_vm14 }
 0x2de   : > { %v988_v35 = vsub.f32 1.0, %v987_v32  ;;  %852 = vmatpush.msrb.mxu1 %v832_v34  ;;  %v914_v36 = vmul.f32 %v2138_v54, %v913_v33  ;;  %1062 = vmatpush.msra.mxu2 %v1036_v53 }
 0x2df   : > { %1337 = vmatmul.msk.f32.vlgmr.msrb.gmra.mxu1 %vm700_vm1, %v827_v27 }
 0x2e0   : > { %v989_v38 = vmul.f32 %v1501_v29, %v988_v35  ;;  %1340 = vst.msk [vmem:[%s2148_s14 + $0x10] sm:$0xff] %vm700_vm1, %v914_v36  ;;  %1341 = vmatmul.msk.f32.vlgmr.msra.gmra.mxu3 %vm700_vm1, %v914_v36 }
 0x2e2   : > { %v990_v40 = vadd.f32 %v1501_v29, %v989_v38 }
 0x2e4   : > { %v994_v42 = vsel %vm993_vm2, %v1501_v29, %v990_v40 }
 0x2e5   : > { %v999_v43 = vsel %vm996_vm3, %v998_v41, %v994_v42 }
 0x2e6   : > { %v1000_v44 = vmul.f32 %v2142_v58, %v999_v43 }
 0x2e7   : > { %v1004_v45 = vpop.permute.xlu0 %1003 }
 0x2e8   : > { %1024 = vmatpush.msra.mxu1 %v1004_v45  ;;  %1344 = vst.msk [vmem:[%s2148_s14 + $0x18] sm:$0xff] %vm700_vm1, %v1000_v44 }
 0x2e9   : > { %1345 = vmatmul.msk.f32.vlgmr.msra.gmra.mxu1 %vm700_vm1, %v1000_v44 }
 0x2f0   : > { %v772_v46 = vpop.f32.mrf.mxu3 }
 0x2f1   : > { %775 = vst.msk [vmem:[#allocation2] sm:$0xff] %vm700_vm1, %v772_v46  ;;  %vm861_vm1 = vcmask 130112  }
 0x35c   : > { %v854_v47 = vpop.f32.mrf.mxu1 }
 0x35d   : > { %858 = vrot.lane.b32.xlu1 %v854_v47, %s1849_s3 }
 0x363   : > { %v940_v48 = vpop.f32.mrf.mxu3 }
 0x364   : > { %944 = vrot.lane.b32.xlu0 %v940_v48, %s1850_s25 }
 0x366   : > { %v1026_v49 = vpop.f32.mrf.mxu1 }
 0x367   : > { %1030 = vrot.lane.b32.xlu2 %v1026_v49, %s1851_s30 }
 0x3c1   : > { %v1031_v56 = vpop.permute.xlu2 %1030 }
 0x3cf   : > { %v859_v54 = vpop.permute.xlu1 %858 }
 0x3d0   : > { %862 = vst.msk [vmem:[#allocation2] sm:$0xff] %vm861_vm1, %v859_v54 }
 0x3d6   : > { %v945_v55 = vpop.permute.xlu0 %944 }
 0x3d7   : > { %948 = vst.msk [vmem:[#allocation2] sm:$0xff] %vm947_vm4, %v945_v55 }
 0x3d8   : > { %1034 = vst.msk [vmem:[#allocation2] sm:$0xff] %vm1033_vm5, %v1031_v56 }
 0x3df   : > { %v1035_v57 = vld [vmem:[#allocation2] sm:$0xff] }
 0x3e0   : > { %1346 = vmatmul.msk.f32.vlgmr.msra.gmra.mxu2 %vm613_vm0, %v1035_v57 }
 0x3e1   : > { %1739 = shalt.err (!%p1736_p13)
}
 0x3e2   : > { %s1852_s17 = smov 128   ;;  %s1349_s11 = sshll.u32 %s1830_s24, 3 }
 0x3e3   : > { %1378 = dma.vmem_to_hbm [thread:$0]  (%p2006_p2), %s1103_s13, 512, %s1105_s18, %s1074_s27, %s1852_s17, %s1852_s17, %s1849_s3  }
 0x3e4   : > { %s2288_s30 = sld [smem:[#allocation37_spill]]  ;;  %s594_s19 = scalar_lea.vmem [#allocation15], %s2078_s5 }
 0x3e5   : > { %s2289_s12 = sld [smem:[#allocation36_spill]]  ;;  %s1087_s15 = sshll.u32 %s594_s19, 4  ;;  %s1088_s15 = int_to_ptr.vmem [resolvable:$true] %s1087_s15 }
 0x3e6   : > { %s1069_s3 = scalar_lea.sflag [#allocation5], %s2075_s21 }
 0x3ea   : > { %s1085_s16 = scalar_lea.hbm %s2288_s30, %s1349_s11  ;;  %s1760_s5 = scalar_lea.hbm %s2288_s30, 16 }
 0x3eb   : > { %v1485_v58 = vld [vmem:[%s2289_s12] ss:$0 sm:$0xff]  ;;  %s1089_s20 = sshll.u32 %s1085_s16, 4  ;;  %s1090_s20 = int_to_ptr.hbm [resolvable:$true] %s1089_s20 }
 0x3ec   : > { %s1754_s24 = sshra.s32 %s1090_s20, 4  ;;  %s1755_s24 = int_to_ptr.hbm [resolvable:$true] %s1754_s24 }
 0x3ed   : > { %s1756_s13 = scalar_lea.hbm %s1755_s24, 8  ;;  %p1761_p8 = scmp.lt.s32.totalorder %s1755_s24, %s2288_s30 }
 0x3ee   : > { %p1757_p0 = scmp.ne.s32.totalorder %s1755_s24, %s1756_s13  ;;  %p1762_p1 = scmp.lt.s32.totalorder %s1760_s5, %s1756_s13 }
 0x3f0   : > { %p1758_p4 = pnand %p1757_p0, %p2006_p2  ;;  %p1763_p3 = por %p1762_p1, %p1761_p8 }
 0x3f2   : > { %p1759_p9 = pneg %p1758_p4 }
 0x3f4   : > { %p1764_p5 = pnand %p1763_p3, %p1759_p9 }
 0x463   : > { %v1064_v59 = vpop.f32.mrf.mxu2 }
 0x464   : > { %v1065_v60 = vadd.f32 %v1485_v58, %v1064_v59 }
 0x466   : > { %1067 = vst.msk [vmem:[%s594_s19] sm:$0xff] %vm613_vm0, %v1065_v60 }
 0x467   : > { %1767 = shalt.err (!%p1764_p5)
}
 0x468   : > { %1377 = dma.vmem_to_hbm [thread:$0]  (%p2006_p2), %s1088_s15, 128, %s1090_s20, %s1069_s3  }
 0x469 PF: > { %s2290_s21 = sld [smem:[#allocation24_spill]]  ;;  %p1405_p10 = pnand %p1311_p6, %p2013_p7 }
 0x46a   : > { %s2292_s1 = sld [smem:[#allocation26_spill]] }
 0x46b   : > { %p1406_p11 = pneg %p1405_p10 }
 0x46f   : > { %s1119_s17 = sand.u32 1, %s2290_s21  }
 0x470   : > { %s1120_s11 = scalar_lea.sflag [#allocation5], %s1119_s17 }
 0x471   : > { %1809 = dma.done.wait (%p1406_p11), %s1120_s11, 128  }
 0x472   : > { %1811 = vsyncadd (%p1406_p11), %s1120_s11, 4294967168  ;;  %s1130_s14 = scalar_lea.sflag [#allocation17], %s1119_s17 }
 0x473   : > { %1813 = dma.done.wait (%p1406_p11), %s1130_s14, 512  }
 0x474   : > { %1815 = vsyncadd (%p1406_p11), %s1130_s14, 4294966784  ;;  %s37_s26 = sadd.s32 1, %s2292_s1   ;;  %s2293_s29 = sld [smem:[#allocation28_spill]] }
 0x475   : > { %p34_p12 = scmp.ge.s32.totalorder %s37_s26, 4   ;;  %s2294_s24 = sld [smem:[#allocation25_spill]] }
 0x476   : > { %s2295_s25 = sld [smem:[#allocation27_spill]]  ;;  %s2296_s21 = smov %s1822_s22 }
 0x477   : > { %s2297_s22 = smov %s1826_s23  ;;  %36 = sbr.rel (!%p34_p12) target bundleno = 22 (0x16), region = 169 }
 0x47a   : > { %s2298_s23 = smov %s2293_s29 }
 0x47c   :  { %1136 = vsyncpa [#allocation4], 1 }
 0x47d   :  { %1138 = vsyncpa [#allocation4 + $0x1], 1 }
 0x47e   :  { %1139 = vsyncpa [#allocation7], 1 }
 0x47f   :  { %1141 = vsyncpa [#allocation7 + $0x1], 1 }
 0x480   :  { %1142 = vsyncpa [#allocation10], 1 }
 0x481   :  { %1143 = vsyncpa [#allocation13], 1 }
 0x482   :  { %1144 = vsyncpa [#allocation5], 1 }
 0x483   :  { %1146 = vsyncpa [#allocation5 + $0x1], 1 }
 0x484   :  { %1147 = vsyncpa [#allocation17], 1 }
 0x485   :  { %1149 = vsyncpa [#allocation17 + $0x1], 1 }

</bundles_post_ra>
